<compile_context>
chip_gen: v7x
topology: tpu7x:2x2x1
jax: 0.10.0
libtpu: 0.0.40
codegen_flags: <defaults>
</compile_context>

<pallas_src>
import functools

import jax
import jax.numpy as jnp
from jax import lax
from jax.experimental import pallas as pl
from jax.experimental.pallas import tpu as pltpu


def _downsampler_kernel(even_ref, shift_ref, w_even_ref, w_shift_ref,
                        bconv_ref, spool_ref, bpool_ref,
                        oconv_ref, opool_ref, *, cin, cconv):
    """One (batch, spatial-tile) grid step, everything channel-major.

    even_ref  : (1, 6*cin, ts)  conv taps with kw in {0,1}; pool taps (1,1),(2,1)
                                are the LAST two Cin-row slabs.
    shift_ref : (1, 3*cin, ts)  conv taps with kw = 2; pool taps (1,2),(2,2)
                                are the FIRST two Cin-row slabs.
    w_even_ref: (cconv, 6*cin)  BN-scaled conv weights, rows ordered like `even`.
    w_shift_ref:(cconv, 3*cin)  BN-scaled conv weights, rows ordered like `shift`.
    bconv_ref : (cconv, 1)      folded conv bias + BN shift (conv channels).
    spool_ref : (cin, 1)        BN scale (pool channels).
    bpool_ref : (cin, 1)        BN shift (pool channels).
    oconv_ref : (1, cconv, ts)  ReLU(BN(conv)), channel-major (lane-dense store).
    opool_ref : (1, cin,   ts)  ReLU(BN(pool)), channel-major (lane-dense store).
    """
    even = even_ref[0]                       # (6*cin, ts) full-block view
    shift = shift_ref[0]                     # (3*cin, ts) full-block view

    # 3x3 / stride-2 conv == two matmuls with the spatial tile on the MXU N axis.
    acc = jnp.dot(w_even_ref[...], even, preferred_element_type=jnp.float32)
    acc = acc + jnp.dot(w_shift_ref[...], shift, preferred_element_type=jnp.float32)
    conv = jnp.maximum(acc + bconv_ref[...], 0.0)          # fused BN (folded) + ReLU
    oconv_ref[0] = conv.astype(oconv_ref.dtype)

    # 2x2 max-pool from tap rows already resident in VMEM: taps (1,1),(2,1),(1,2),(2,2).
    p = jnp.maximum(
        jnp.maximum(even[4 * cin:5 * cin, :], even[5 * cin:6 * cin, :]),
        jnp.maximum(shift[0:cin, :], shift[cin:2 * cin, :]),
    ).astype(jnp.float32)
    opool_ref[0] = jnp.maximum(p * spool_ref[...] + bpool_ref[...], 0.0
                               ).astype(opool_ref.dtype)


def _pick_tile_px(S, cin, cout, in_bpe, n_batch, vmem_budget):
    """Spatial pixels per tile: as large as the VMEM budget allows (multiple of 128,
    <= 16k px).  For batch==1, keep an even tile count (v7x has 2 TensorCores)."""
    if S <= 512:
        return S                                        # one full tile per image
    per_px = 2 * (9 * cin * in_bpe + cout * 4)          # double-buffered taps + outputs
    ts = int(min(vmem_budget // max(per_px, 1), 16384, S))
    ts = max(128, (ts // 128) * 128)
    if n_batch == 1:
        nt = pl.cdiv(S, ts)
        while (nt < 2 or nt % 2 == 1) and ts > 128:
            ts -= 128
            nt = pl.cdiv(S, ts)
    return ts


def downsampler_block(x_nchw, weight, conv_bias, gamma, beta, run_mean, run_var,
                      eps=1e-3, plane_dtype=jnp.float32):
    """x_nchw: (N, Cin, H, W).  weight: (Cconv, Cin, 3, 3), Cconv = Cout - Cin.
    Returns NCHW (N, Cout, H//2, W//2)."""
    N, Cin, H, W = x_nchw.shape
    Cconv = weight.shape[0]
    Cout = Cconv + Cin
    # TODO(synk): odd H/W (where PyTorch conv and pool output sizes differ) not handled.
    assert H % 2 == 0 and W % 2 == 0, "DownsamplerBlock kernel requires even H and W"
    Ho, Wo = H // 2, W // 2
    S = Ho * Wo
    f32 = jnp.float32

    # ---- single XLA layout pass: pad + per-output-pixel tap gather (channel-major) ----
    xp = jnp.pad(x_nchw.astype(f32), ((0, 0), (0, 0), (1, 1), (1, 1)))  # (N,Cin,H+2,W+2)

    def tap(kh, kw):                 # (N, Cin, Ho, Wo) slab: xpad[:, :, 2i+kh, 2j+kw]
        return xp[:, :, kh:kh + 2 * Ho:2, kw:kw + 2 * Wo:2]

    # Slab orders chosen so the 4 max-pool taps sit at fixed sublane ranges.
    even_order = ((0, 0), (0, 1), (1, 0), (2, 0), (1, 1), (2, 1))       # kw in {0,1}
    shift_order = ((1, 2), (2, 2), (0, 2))                              # kw = 2
    even = jnp.stack([tap(kh, kw) for kh, kw in even_order], axis=1)    # (N,6,Cin,Ho,Wo)
    shift = jnp.stack([tap(kh, kw) for kh, kw in shift_order], axis=1)  # (N,3,Cin,Ho,Wo)
    even = even.reshape(N, 6 * Cin, S).astype(plane_dtype)              # lanes = spatial
    shift = shift.reshape(N, 3 * Cin, S).astype(plane_dtype)
    # TODO(synk): a memory_space=pl.ANY + halo-DMA variant would avoid materializing the
    # tap slabs in HBM entirely; bf16 plane_dtype already halves that traffic.

    # ---- fold eval-mode BN into the conv weights / biases ----
    gamma, beta = gamma.astype(f32), beta.astype(f32)
    run_mean, run_var = run_mean.astype(f32), run_var.astype(f32)
    scale = gamma * lax.rsqrt(run_var + eps)                            # (Cout,)
    sc_c, sc_p = scale[:Cconv], scale[Cconv:]
    w_s = weight.astype(f32) * sc_c[:, None, None, None]                # (Cconv,Cin,3,3)
    w_even = jnp.concatenate([w_s[:, :, kh, kw] for kh, kw in even_order],
                             axis=1).astype(plane_dtype)                # (Cconv, 6*Cin)
    w_shift = jnp.concatenate([w_s[:, :, kh, kw] for kh, kw in shift_order],
                              axis=1).astype(plane_dtype)               # (Cconv, 3*Cin)
    bconv = ((conv_bias.astype(f32) - run_mean[:Cconv]) * sc_c
             + beta[:Cconv]).reshape(Cconv, 1)
    spool = sc_p.reshape(Cin, 1)
    bpool = (beta[Cconv:] - run_mean[Cconv:] * sc_p).reshape(Cin, 1)

    # ---- tile size from the per-generation VMEM capacity (v7x: 64 MiB/TC) ----
    try:
        vmem_cap = int(getattr(pltpu.get_tpu_info(), "vmem_capacity_bytes",
                               64 * 1024 * 1024))
    except Exception:
        vmem_cap = 64 * 1024 * 1024
    in_bpe = jnp.dtype(plane_dtype).itemsize
    ts = _pick_tile_px(S, Cin, Cout, in_bpe, N, vmem_budget=vmem_cap // 2)
    n_tiles = pl.cdiv(S, ts)            # short last tile is masked by Pallas

    kernel = functools.partial(_downsampler_kernel, cin=Cin, cconv=Cconv)

    # Weight / bias index maps are constant across the grid -> fetched once, resident.
    # TODO(synk): sweep pipeline_mode=pl.Buffered(3) on the plane specs for v7x tiles.
    in_specs = [
        pl.BlockSpec((1, 6 * Cin, ts), lambda n, t: (n, 0, t)),
        pl.BlockSpec((1, 3 * Cin, ts), lambda n, t: (n, 0, t)),
        pl.BlockSpec((Cconv, 6 * Cin), lambda n, t: (0, 0)),
        pl.BlockSpec((Cconv, 3 * Cin), lambda n, t: (0, 0)),
        pl.BlockSpec((Cconv, 1), lambda n, t: (0, 0)),
        pl.BlockSpec((Cin, 1), lambda n, t: (0, 0)),
        pl.BlockSpec((Cin, 1), lambda n, t: (0, 0)),
    ]
    out_specs = [
        pl.BlockSpec((1, Cconv, ts), lambda n, t: (n, 0, t)),
        pl.BlockSpec((1, Cin, ts), lambda n, t: (n, 0, t)),
    ]
    out_shape = (jax.ShapeDtypeStruct((N, Cconv, S), f32),
                 jax.ShapeDtypeStruct((N, Cin, S), f32))

    in_blk = 9 * Cin * ts * in_bpe
    out_blk = Cout * ts * 4
    w_blk = 9 * Cin * Cconv * in_bpe + (Cconv + 2 * Cin) * 4
    vmem_limit = int(min(3 * vmem_cap // 4,
                         max(16 * 1024 * 1024,
                             3 * (in_blk + out_blk) + 2 * w_blk + (2 << 20))))

    flops = 2 * N * S * 9 * Cin * Cconv + 8 * N * S * Cout
    bytes_accessed = (N * S * 9 * Cin + 9 * Cin * Cconv) * in_bpe + N * S * Cout * 4
    cost = pl.CostEstimate(flops=int(flops), transcendentals=0,
                           bytes_accessed=int(bytes_accessed))

    conv_o, pool_o = pl.pallas_call(
        kernel,
        out_shape=out_shape,
        grid_spec=pltpu.PrefetchScalarGridSpec(
            num_scalar_prefetch=0,
            grid=(N, n_tiles),
            in_specs=in_specs,
            out_specs=out_specs,
        ),
        compiler_params=pltpu.CompilerParams(
            dimension_semantics=("parallel", "parallel"),
            vmem_limit_bytes=vmem_limit,
        ),
        cost_estimate=cost,
    )(even, shift, w_even, w_shift, bconv, spool, bpool)

    # Outputs are already channel-major: channel concat + free reshape (no transpose).
    return jnp.concatenate([conv_o, pool_o], axis=1).reshape(N, Cout, Ho, Wo)


def _reference(x, weight, conv_bias, gamma, beta, run_mean, run_var, eps=1e-3):
    conv = lax.conv_general_dilated(
        x, weight, window_strides=(2, 2), padding=((1, 1), (1, 1)),
        dimension_numbers=("NCHW", "OIHW", "NCHW"))
    conv = conv + conv_bias[None, :, None, None]
    pool = lax.reduce_window(x, -jnp.inf, lax.max,
                             (1, 1, 2, 2), (1, 1, 2, 2), "VALID")
    cat = jnp.concatenate([conv, pool], axis=1)
    scale = gamma / jnp.sqrt(run_var + eps)
    bn = (cat - run_mean[None, :, None, None]) * scale[None, :, None, None] \
        + beta[None, :, None, None]
    return jnp.maximum(bn, 0.0)


if __name__ == "__main__":
    # Small shapes consistent with the module: in_channel=4, out_channel=8, 16x16 spatial.
    N, Cin, H, W = 2, 4, 16, 16
    Cout = 8
    Cconv = Cout - Cin

    key = jax.random.PRNGKey(0)
    kx, kw, kb, kg, kbe, km, kv = jax.random.split(key, 7)
    x = jax.random.normal(kx, (N, Cin, H, W), dtype=jnp.float32)
    weight = jax.random.normal(kw, (Cconv, Cin, 3, 3), dtype=jnp.float32) * 0.1
    conv_bias = jax.random.normal(kb, (Cconv,), dtype=jnp.float32) * 0.1
    gamma = 1.0 + 0.1 * jax.random.normal(kg, (Cout,), dtype=jnp.float32)
    beta = 0.1 * jax.random.normal(kbe, (Cout,), dtype=jnp.float32)
    run_mean = 0.1 * jax.random.normal(km, (Cout,), dtype=jnp.float32)
    run_var = 1.0 + 0.1 * jax.random.uniform(kv, (Cout,), dtype=jnp.float32)

    ref = _reference(x, weight, conv_bias, gamma, beta, run_mean, run_var)

    # f32 tap slabs: strict check against the f32 reference.
    out = jax.jit(downsampler_block)(x, weight, conv_bias, gamma, beta,
                                     run_mean, run_var)
    out = jax.block_until_ready(out)
    assert out.shape == (N, Cout, H // 2, W // 2), out.shape
    assert jnp.allclose(out, ref, atol=1e-4, rtol=1e-4), \
        float(jnp.max(jnp.abs(out - ref)))

    # bf16 tap slabs (perf-review item: halves plane HBM bytes, native MXU dtype);
    # looser tolerance since the planes themselves are rounded to bf16.
    out_bf16 = jax.jit(functools.partial(downsampler_block,
                                         plane_dtype=jnp.bfloat16))(
        x, weight, conv_bias, gamma, beta, run_mean, run_var)
    out_bf16 = jax.block_until_ready(out_bf16)
    assert jnp.allclose(out_bf16, ref, atol=8e-2, rtol=5e-2), \
        float(jnp.max(jnp.abs(out_bf16 - ref)))

    print("KERNEL_OK")
</pallas_src>

<mosaic_0001>
module attributes {stable_mosaic.version = 11 : i64} {
  func.func @_downsampler_kernel(%arg0: i32, %arg1: i32, %arg2: memref<1x24x64xf32, #tpu.memory_space<vmem>>, %arg3: memref<1x12x64xf32, #tpu.memory_space<vmem>>, %arg4: memref<4x24xf32, #tpu.memory_space<vmem>>, %arg5: memref<4x12xf32, #tpu.memory_space<vmem>>, %arg6: memref<4x1xf32, #tpu.memory_space<vmem>>, %arg7: memref<4x1xf32, #tpu.memory_space<vmem>>, %arg8: memref<4x1xf32, #tpu.memory_space<vmem>>, %arg9: memref<1x4x64xf32, #tpu.memory_space<vmem>>, %arg10: memref<1x4x64xf32, #tpu.memory_space<vmem>>) attributes {dimension_semantics = [#tpu.dimension_semantics<parallel>, #tpu.dimension_semantics<parallel>], iteration_bounds = array<i64: 2, 1>, scalar_prefetch = 0 : i64, scratch_operands = 0 : i64, tpu.core_type = #tpu.core_type<tc>, window_params = [{transform_indices = @transform_0, window_bounds = array<i64: 1, 24, 64>}, {transform_indices = @transform_1, window_bounds = array<i64: 1, 12, 64>}, {pipeline_mode = #tpu.pipeline_mode<synchronous>, transform_indices = @transform_2, window_bounds = array<i64: 4, 24>}, {pipeline_mode = #tpu.pipeline_mode<synchronous>, transform_indices = @transform_3, window_bounds = array<i64: 4, 12>}, {pipeline_mode = #tpu.pipeline_mode<synchronous>, transform_indices = @transform_4, window_bounds = array<i64: 4, 1>}, {pipeline_mode = #tpu.pipeline_mode<synchronous>, transform_indices = @transform_5, window_bounds = array<i64: 4, 1>}, {pipeline_mode = #tpu.pipeline_mode<synchronous>, transform_indices = @transform_6, window_bounds = array<i64: 4, 1>}, {transform_indices = @transform_7, window_bounds = array<i64: 1, 4, 64>}, {transform_indices = @transform_8, window_bounds = array<i64: 1, 4, 64>}]} {
    %c0 = arith.constant 0 : index
    %c0_0 = arith.constant 0 : index
    %c0_1 = arith.constant 0 : index
    %0 = vector.load %arg2[%c0, %c0_0, %c0_1] : memref<1x24x64xf32, #tpu.memory_space<vmem>>, vector<1x24x64xf32>
    %1 = vector.shape_cast %0 : vector<1x24x64xf32> to vector<24x64xf32>
    %c0_2 = arith.constant 0 : index
    %c0_3 = arith.constant 0 : index
    %c0_4 = arith.constant 0 : index
    %2 = vector.load %arg3[%c0_2, %c0_3, %c0_4] : memref<1x12x64xf32, #tpu.memory_space<vmem>>, vector<1x12x64xf32>
    %3 = vector.shape_cast %2 : vector<1x12x64xf32> to vector<12x64xf32>
    %c0_5 = arith.constant 0 : index
    %c0_6 = arith.constant 0 : index
    %4 = vector.load %arg4[%c0_5, %c0_6] : memref<4x24xf32, #tpu.memory_space<vmem>>, vector<4x24xf32>
    %cst = arith.constant dense<0.000000e+00> : vector<4x64xf32>
    %5 = tpu.matmul %4, %1, %cst {dimension_numbers = #tpu.dot_dimension_numbers<[1], [0], [0], [1], [0, 0, 1, 1], [], []>} : vector<4x24xf32>, vector<24x64xf32>, vector<4x64xf32> -> vector<4x64xf32>
    %c0_7 = arith.constant 0 : index
    %c0_8 = arith.constant 0 : index
    %6 = vector.load %arg5[%c0_7, %c0_8] : memref<4x12xf32, #tpu.memory_space<vmem>>, vector<4x12xf32>
    %cst_9 = arith.constant dense<0.000000e+00> : vector<4x64xf32>
    %7 = tpu.matmul %6, %3, %cst_9 {dimension_numbers = #tpu.dot_dimension_numbers<[1], [0], [0], [1], [0, 0, 1, 1], [], []>} : vector<4x12xf32>, vector<12x64xf32>, vector<4x64xf32> -> vector<4x64xf32>
    %8 = arith.addf %5, %7 : vector<4x64xf32>
    %c0_10 = arith.constant 0 : index
    %c0_11 = arith.constant 0 : index
    %9 = vector.load %arg6[%c0_10, %c0_11] : memref<4x1xf32, #tpu.memory_space<vmem>>, vector<4x1xf32>
    %10 = vector.broadcast %9 : vector<4x1xf32> to vector<4x64xf32>
    %11 = arith.addf %8, %10 : vector<4x64xf32>
    %cst_12 = arith.constant 0.000000e+00 : f32
    %12 = vector.broadcast %cst_12 : f32 to vector<4x64xf32>
    %13 = arith.maximumf %11, %12 : vector<4x64xf32>
    %c0_13 = arith.constant 0 : index
    %c0_14 = arith.constant 0 : index
    %c0_15 = arith.constant 0 : index
    %14 = vector.load %arg9[%c0_13, %c0_14, %c0_15] : memref<1x4x64xf32, #tpu.memory_space<vmem>>, vector<1x4x64xf32>
    %15 = vector.shape_cast %14 : vector<1x4x64xf32> to vector<4x64xf32>
    %16 = vector.shape_cast %13 : vector<4x64xf32> to vector<1x4x64xf32>
    tpu.vector_store %arg9[%c0_13, %c0_14, %c0_15], %16 {strides = array<i32>} : memref<1x4x64xf32, #tpu.memory_space<vmem>>, vector<1x4x64xf32>,
    %17 = vector.extract_strided_slice %1 {offsets = [16, 0], sizes = [4, 64], strides = [1, 1]} : vector<24x64xf32> to vector<4x64xf32>
    %18 = vector.extract_strided_slice %1 {offsets = [20, 0], sizes = [4, 64], strides = [1, 1]} : vector<24x64xf32> to vector<4x64xf32>
    %19 = arith.maximumf %17, %18 : vector<4x64xf32>
    %20 = vector.extract_strided_slice %3 {offsets = [0, 0], sizes = [4, 64], strides = [1, 1]} : vector<12x64xf32> to vector<4x64xf32>
    %21 = vector.extract_strided_slice %3 {offsets = [4, 0], sizes = [4, 64], strides = [1, 1]} : vector<12x64xf32> to vector<4x64xf32>
    %22 = arith.maximumf %20, %21 : vector<4x64xf32>
    %23 = arith.maximumf %19, %22 : vector<4x64xf32>
    %c0_16 = arith.constant 0 : index
    %c0_17 = arith.constant 0 : index
    %24 = vector.load %arg7[%c0_16, %c0_17] : memref<4x1xf32, #tpu.memory_space<vmem>>, vector<4x1xf32>
    %25 = vector.broadcast %24 : vector<4x1xf32> to vector<4x64xf32>
    %26 = arith.mulf %23, %25 : vector<4x64xf32>
    %c0_18 = arith.constant 0 : index
    %c0_19 = arith.constant 0 : index
    %27 = vector.load %arg8[%c0_18, %c0_19] : memref<4x1xf32, #tpu.memory_space<vmem>>, vector<4x1xf32>
    %28 = vector.broadcast %27 : vector<4x1xf32> to vector<4x64xf32>
    %29 = arith.addf %26, %28 : vector<4x64xf32>
    %cst_20 = arith.constant 0.000000e+00 : f32
    %30 = vector.broadcast %cst_20 : f32 to vector<4x64xf32>
    %31 = arith.maximumf %29, %30 : vector<4x64xf32>
    %c0_21 = arith.constant 0 : index
    %c0_22 = arith.constant 0 : index
    %c0_23 = arith.constant 0 : index
    %32 = vector.load %arg10[%c0_21, %c0_22, %c0_23] : memref<1x4x64xf32, #tpu.memory_space<vmem>>, vector<1x4x64xf32>
    %33 = vector.shape_cast %32 : vector<1x4x64xf32> to vector<4x64xf32>
    %34 = vector.shape_cast %31 : vector<4x64xf32> to vector<1x4x64xf32>
    tpu.vector_store %arg10[%c0_21, %c0_22, %c0_23], %34 {strides = array<i32>} : memref<1x4x64xf32, #tpu.memory_space<vmem>>, vector<1x4x64xf32>,
    return
  }
  func.func @transform_0(%arg0: i32, %arg1: i32) -> (i32, i32, i32) {
    %c0_i32 = arith.constant 0 : i32
    %c0_i32_0 = arith.constant 0 : i32
    return %arg0, %c0_i32, %arg1 : i32, i32, i32
  }
  func.func @transform_1(%arg0: i32, %arg1: i32) -> (i32, i32, i32) {
    %c0_i32 = arith.constant 0 : i32
    %c0_i32_0 = arith.constant 0 : i32
    return %arg0, %c0_i32, %arg1 : i32, i32, i32
  }
  func.func @transform_2(%arg0: i32, %arg1: i32) -> (i32, i32) {
    %c0_i32 = arith.constant 0 : i32
    %c0_i32_0 = arith.constant 0 : i32
    %c0_i32_1 = arith.constant 0 : i32
    return %c0_i32, %c0_i32_0 : i32, i32
  }
  func.func @transform_3(%arg0: i32, %arg1: i32) -> (i32, i32) {
    %c0_i32 = arith.constant 0 : i32
    %c0_i32_0 = arith.constant 0 : i32
    %c0_i32_1 = arith.constant 0 : i32
    return %c0_i32, %c0_i32_0 : i32, i32
  }
  func.func @transform_4(%arg0: i32, %arg1: i32) -> (i32, i32) {
    %c0_i32 = arith.constant 0 : i32
    %c0_i32_0 = arith.constant 0 : i32
    %c0_i32_1 = arith.constant 0 : i32
    return %c0_i32, %c0_i32_0 : i32, i32
  }
  func.func @transform_5(%arg0: i32, %arg1: i32) -> (i32, i32) {
    %c0_i32 = arith.constant 0 : i32
    %c0_i32_0 = arith.constant 0 : i32
    %c0_i32_1 = arith.constant 0 : i32
    return %c0_i32, %c0_i32_0 : i32, i32
  }
  func.func @transform_6(%arg0: i32, %arg1: i32) -> (i32, i32) {
    %c0_i32 = arith.constant 0 : i32
    %c0_i32_0 = arith.constant 0 : i32
    %c0_i32_1 = arith.constant 0 : i32
    return %c0_i32, %c0_i32_0 : i32, i32
  }
  func.func @transform_7(%arg0: i32, %arg1: i32) -> (i32, i32, i32) {
    %c0_i32 = arith.constant 0 : i32
    %c0_i32_0 = arith.constant 0 : i32
    return %arg0, %c0_i32, %arg1 : i32, i32, i32
  }
  func.func @transform_8(%arg0: i32, %arg1: i32) -> (i32, i32, i32) {
    %c0_i32 = arith.constant 0 : i32
    %c0_i32_0 = arith.constant 0 : i32
    return %arg0, %c0_i32, %arg1 : i32, i32, i32
  }
}

</mosaic_0001>

<bundles_post_ra>
// kernel: downsampler_block.1
= control target key start
LH: loop header
LB: loop body
LE: loop exit
PB: predicated region body
PF: predicated region fallthrough
CT: control target
= control target key end

     0   :  { %s867_s27 = smov 0   ;;  %s869_s28 = smov 0   ;;  %s927_s0 = inlined_call_operand.vmem [shape: f32[2,24,64], index: 0, kind: input, shape index: {}]   ;;  %s928_s1 = inlined_call_operand.vmem [shape: f32[2,12,64], index: 1, kind: input, shape index: {}]   ;;  %s929_s2 = inlined_call_operand.vmem [shape: f32[4,24], index: 2, kind: input, shape index: {}]   ;;  %s930_s3 = inlined_call_operand.vmem [shape: f32[4,12], index: 3, kind: input, shape index: {}]   ;;  %s931_s4 = inlined_call_operand.vmem [shape: f32[4,1], index: 4, kind: input, shape index: {}]   ;;  %s932_s5 = inlined_call_operand.vmem [shape: f32[4,1], index: 5, kind: input, shape index: {}]   ;;  %s933_s6 = inlined_call_operand.vmem [shape: f32[4,1], index: 6, kind: input, shape index: {}]   ;;  %s934_s7 = inlined_call_operand.vmem [shape: f32[2,4,64], index: 7, kind: output, shape index: {0}]   ;;  %s935_s8 = inlined_call_operand.vmem [shape: f32[2,4,64], index: 8, kind: output, shape index: {1}]  }
   0x1   :  { %s871_s29 = smov 0  }
   0x2 LB: > { %s31_s30 = sadd.s32 1, %s811_s28  ;;  %p719_p0 = scmp.ge.s32.totalorder %s815_s29, 1  ;;  %s815_s29 = sphi %s871_s29, %s19_s29   ;;  %s811_s28 = sphi %s869_s28, %s937_s28   ;;  %s807_s27 = sphi %s867_s27, %s936_s27  }
   0x3   : > { %p33_p1 = scmp.ge.s32.totalorder %s31_s30, 2  ;;  %p301_p2 = scmp.lt.s32.totalorder %s815_s29, 3 }
   0x5   : > { %s939_s30 = smov (%p33_p1, %s31_s30), 0  ;;  %p302_p3 = pnand %p719_p0, %p301_p2 }
   0x6   : > { %p355_p4 = scmp.lt.s32.totalorder (!%p302_p3), %s807_s27, 1  ;;  %v817_v0 = vmov (!%p302_p3), 0.0|0.0   ;;  %vm818_vm0 = vmmov (!%p302_p3), 0   ;;  %v819_v1 = vmov (!%p302_p3), 0.0   ;;  %v563_v2 = vld [vmem:[%s932_s5] sm:$0xf] (!%p302_p3) }
   0x7   : > { %305 = sbr.rel (%p302_p3) target bundleno = 245 (0xf5), region = 48  ;;  %758 = vmatprep.subr.bf16.mxu1 (!%p302_p3), %v817_v0  ;;  %754 = vmatprep.subr.bf16.mxu0 (!%p302_p3), %v817_v0  ;;  %vm396_vm1 = vcmask (!%p302_p3), 1043456   ;;  %v820_v3 = vmov (!%p302_p3), 0   ;;  %v570_v4 = vld [vmem:[%s933_s6] sm:$0xf] (!%p302_p3)  ;;  %vm821_vm2 = vmmov (!%p302_p3), 1  }
   0x8   : > { %742 = vmatprep.mubr.msk.f32.mxu0 (!%p302_p3), %vm818_vm0, %v819_v1  ;;  %751 = vmatprep.mubr.msk.f32.mxu1 (!%p302_p3), %vm818_vm0, %v819_v1  ;;  %v544_v5 = vld [vmem:[%s931_s4] sm:$0xf] (!%p302_p3)  ;;  %vm756_vm3 = vmpackc.low (!%p302_p3), %vm396_vm1, %vm821_vm2  ;;  %vm392_vm4 = vcmask (!%p302_p3), 97280   ;;  %vm470_vm5 = vcmask (!%p302_p3), 195584   ;;  %vm552_vm6 = vcmask (!%p302_p3), 519168  }
   0x9   : > { %791 = vset.pattern.permute.xlu0 (!%p302_p3), %v820_v3  ;;  %792 = vset.pattern.permute.xlu1 (!%p302_p3), %v820_v3  ;;  %v391_v15 = vld [vmem:[%s930_s3] sm:$0xf] (!%p302_p3) }
   0xa   : > { %566 = vperm.xlu0 (!%p302_p3), %791, %v563_v2   ;;  %573 = vperm.xlu1 (!%p302_p3), %792, %v570_v4   ;;  %v390_v18 = vld [vmem:[%s929_s2] sm:$0xf] (!%p302_p3) }
   0xe   : > { %s941_s27 = smov (!%p355_p4, %s807_s27), 1  ;;  %547 = vperm.xlu0 %791, %v544_v5  }
   0xf   : > { %s761_s13 = smul.u32 24, %s941_s27  ;;  %s730_s14 = sshll.u32 %s941_s27, 4 }
  0x10   : > { %s370_s17 = scalar_lea.vmem %s928_s1, %s730_s14  ;;  %s723_s9 = sshll.u32 %s941_s27, 2 }
  0x11   : > { %s362_s22 = scalar_lea.vmem %s927_s0, %s761_s13  ;;  %v388_v6 = vld [vmem:[%s370_s17] sm:$0xff]  ;;  %v389_v7 = vld [vmem:[%s370_s17 + $0x8] sm:$0xf]  ;;  %s384_s12 = scalar_lea.vmem %s935_s8, %s723_s9 }
  0x12   : > { %v385_v8 = vld [vmem:[%s362_s22] sm:$0xff]  ;;  %v386_v9 = vld [vmem:[%s362_s22 + $0x8] sm:$0xff]  ;;  %v755_v10 = vpack.c.bf16 %v389_v7, %v388_v6  ;;  %v387_v11 = vld [vmem:[%s362_s22 + $0x10] sm:$0xff]  ;;  %v559_v12 = vrot.slane %v388_v6, 4  ;;  %s377_s15 = scalar_lea.vmem %s934_s7, %s723_s9 }
  0x13   : > { %v759_v13 = vpack.c.bf16 %v386_v9, %v385_v8  ;;  %v555_v14 = vrot.slane %v387_v11, 4 }
  0x14   : > { %757 = vmatpush3.bf16.msk.msra.mxu0 %vm756_vm3, %v755_v10  ;;  %v561_v16 = vmax.f32 %v388_v6, %v559_v12 }
  0x15   : > { %760 = vmatpush3.bf16.msra.mxu1 %v759_v13  ;;  %v557_v17 = vmax.f32 %v387_v11, %v555_v14 }
  0x16   : > { %749 = vmatprep.subr.mxu1 %v819_v1 }
  0x17   : > { %743 = vmatmul.mubr.msk.f32.vlgmr.msra.gmra.mrb[0].mxu0 %vm392_vm4, %v391_v15  ;;  %v562_v19 = vmax.f32 %v557_v17, %v561_v16 }
  0x19   : > { %750 = vmatpush3.msra.mxu1 %v387_v11 }
  0x1a   : > { %752 = vmatmul.mubr.msk.f32.vlgmr.msra.gmra.mrb[0].mxu1 %vm470_vm5, %v390_v18 }
  0x89   : > { %v567_v20 = vpop.permute.xlu0 %566  ;;  %v574_v21 = vpop.permute.xlu1 %573 }
  0x8a   : > { %v569_v22 = vmul.f32 %v567_v20, %v562_v19 }
  0x8c   : > { %v576_v23 = vadd.f32 %v574_v21, %v569_v22 }
  0x8d   : > { %v548_v30 = vpop.permute.xlu0 %547 }
  0x8e   : > { %v577_v24 = vmax.f32 %v576_v23, 0.0 }
  0x90   : > { %578 = vst.msk [vmem:[%s384_s12] sm:$0xf] %vm552_vm6, %v577_v24 }
  0xea   : > { %v466_v25 = vpop.f32.mrb[0].mxu0 }
  0xeb   : > { %v744_v26 = vpop.f32.mrb[1].mxu0 }
  0xed   : > { %v540_v27 = vpop.f32.mrb[0].mxu1 }
  0xee   : > { %v541_v28 = vadd.f32 %v540_v27, %v466_v25  ;;  %v753_v29 = vpop.f32.mrb[1].mxu1 }
  0xf0   : > { %v550_v31 = vadd.f32 %v548_v30, %v541_v28 }
  0xf2   : > { %v551_v32 = vmax.f32 %v550_v31, 0.0 }
  0xf4   : > { %553 = vst.msk [vmem:[%s377_s15] sm:$0xf] %vm552_vm6, %v551_v32 }
  0xf5 PF: > { %s19_s29 = sadd.s32 1, %s815_s29   ;;  %s936_s27 = smov %s811_s28 }
  0xf6   : > { %p16_p5 = scmp.ge.s32.totalorder %s19_s29, 4   ;;  %s937_s28 = smov %s939_s30 }
  0xf8   :  { %18 = sbr.rel (!%p16_p5) target bundleno = 2 (0x2), region = 93 }

</bundles_post_ra>
